<compile_context>
chip_gen: v5e
topology: v5e:2x2
jax: 0.10.0
libtpu: 0.0.40
codegen_flags: <defaults>
</compile_context>

<pallas_src>
import jax
import jax.numpy as jnp
from jax import lax
from jax.experimental import pallas as pl
from jax.experimental.pallas import tpu as pltpu


# ------------------------------ Pallas kernel ------------------------------ #

def _make_kernel(N, H, WC):
    NH = N * H

    def kernel(x_ref, w2_ref, b2_ref, w1_ref, b1_ref, o_ref, xpad_ref, a_ref):
        """Fused BasicBlockDec (stride=1) for the whole batch, all in VMEM.

        x_ref:    (N, H, W*C)     lane-dense activations
        w*_ref:   (3*W*C, W*C)    banded conv weights, BN scale folded in
        b*_ref:   (1, W*C)        folded BN bias, tiled over W
        o_ref:    (N, H, W*C)     output
        xpad_ref: (N, H+2, W*C)   row-halo scratch (reused by both convs)
        a_ref:    (N*H, 3*W*C)    im2col patch slab
        """

        def conv(w_ref):
            # Build the im2col slab: three row-shifted (ky) views of the
            # row-padded activations, side by side along the lane axis,
            # then ONE MXU matmul per conv.  Column (kx) taps and the
            # W-edge zero padding live inside the banded weight matrix.
            for ky in range(3):
                a_ref[:, ky * WC:(ky + 1) * WC] = (
                    xpad_ref[:, ky:ky + H, :].reshape(NH, WC))
            return jnp.dot(a_ref[...], w_ref[...],
                           preferred_element_type=jnp.float32)

        # Halo-only zeroing: just the two padded rows (the interior is always
        # overwritten below).  No column halo exists at all.
        zrow = jnp.zeros((N, 1, WC), jnp.float32)
        xpad_ref[:, 0:1, :] = zrow
        xpad_ref[:, H + 1:H + 2, :] = zrow

        # -- conv2 + bn2 (scale folded into w2; only the bias is added here) --
        xpad_ref[:, 1:H + 1, :] = x_ref[...]
        y = conv(w2_ref) + b2_ref[...]                    # (N*H, W*C) pre-act

        # -- relu(y) back into the SAME halo scratch, then conv1 + bn1 --
        xpad_ref[:, 1:H + 1, :] = jnp.maximum(y, 0.0).reshape(N, H, WC)
        out = conv(w1_ref) + b1_ref[...] + y              # identity shortcut
        o_ref[...] = jnp.maximum(out, 0.0).reshape(N, H, WC).astype(o_ref.dtype)

    return kernel


def fused_basic_block_dec(x2d, w2b, b2t, w1b, b1t):
    """x2d: (N, H, W*C); w*b: (3*W*C, W*C) banded weights; b*t: (1, W*C)."""
    N, H, WC = x2d.shape
    KWC = 3 * WC
    return pl.pallas_call(
        _make_kernel(N, H, WC),
        out_shape=jax.ShapeDtypeStruct((N, H, WC), jnp.float32),
        grid_spec=pltpu.PrefetchScalarGridSpec(
            num_scalar_prefetch=0,
            grid=(1,),
            in_specs=[
                pl.BlockSpec((N, H, WC), lambda i: (0, 0, 0)),
                pl.BlockSpec((KWC, WC), lambda i: (0, 0)),
                pl.BlockSpec((1, WC), lambda i: (0, 0)),
                pl.BlockSpec((KWC, WC), lambda i: (0, 0)),
                pl.BlockSpec((1, WC), lambda i: (0, 0)),
            ],
            out_specs=pl.BlockSpec((N, H, WC), lambda i: (0, 0, 0)),
            scratch_shapes=[
                pltpu.VMEM((N, H + 2, WC), jnp.float32),   # row-halo buffer
                pltpu.VMEM((N * H, KWC), jnp.float32),     # im2col slab
            ],
        ),
        compiler_params=pltpu.CompilerParams(
            dimension_semantics=("arbitrary",)),
    )(x2d, w2b, b2t, w1b, b1t)


# ------------------------------- JAX wrapper -------------------------------- #

def bn_fold(gamma, beta, running_mean, running_var, eps=1e-5):
    scale = gamma / jnp.sqrt(running_var + eps)     # (C,)
    bias = beta - running_mean * scale              # (C,)
    return scale, bias


def make_banded_conv_weights(w_hwio, W):
    """(3,3,Cin,Cout) HWIO 'same' conv -> banded (3*W*Cin, W*Cout) matrix.

    Rows ordered (ky, j, ci) over the 3 row taps and the W real input
    columns; cols ordered (w, co) over output columns.  The kx taps and the
    left/right zero padding are baked into the band, so the kernel needs no
    column halo and exactly one matmul per conv.
    """
    KH, KW, Cin, Cout = w_hwio.shape
    j = jnp.arange(W)[:, None]                       # input column
    w = jnp.arange(W)[None, :]                       # output column
    kx = j - w + (KW // 2)                           # (W, W)
    valid = (kx >= 0) & (kx < KW)
    blk = w_hwio[:, jnp.clip(kx, 0, KW - 1), :, :]   # (KH, W, W, Cin, Cout)
    blk = jnp.where(valid[None, :, :, None, None], blk, 0.0)
    # rows (ky, j, ci), cols (w, co)
    return blk.transpose(0, 1, 3, 2, 4).reshape(KH * W * Cin, W * Cout)


@jax.jit
def basic_block_dec_forward(x_nchw, params):
    """x = bn2(conv2(x)); out = relu(x); out = bn1(conv1(out)); out += x; relu."""
    N, C, H, W = x_nchw.shape
    # TODO(synk): NCHW<->NHWC transposes exist only because the PyTorch module
    # is NCHW; in a fully NHWC model region they disappear.
    x2d = jnp.transpose(x_nchw, (0, 2, 3, 1)).reshape(N, H, W * C)

    s2, b2 = bn_fold(params["bn2_gamma"], params["bn2_beta"],
                     params["bn2_mean"], params["bn2_var"])
    s1, b1 = bn_fold(params["bn1_gamma"], params["bn1_beta"],
                     params["bn1_mean"], params["bn1_var"])

    # Fold BN scale into the (bias-free) conv weights and build the banded
    # matmul form at trace time (no in-kernel weight rearrangement).
    w2b = make_banded_conv_weights(params["w2"] * s2, W)
    w1b = make_banded_conv_weights(params["w1"] * s1, W)
    b2t = jnp.tile(b2, W).reshape(1, W * C)
    b1t = jnp.tile(b1, W).reshape(1, W * C)

    out2d = fused_basic_block_dec(x2d, w2b, b2t, w1b, b1t)
    return jnp.transpose(out2d.reshape(N, H, W, C), (0, 3, 1, 2))


# Pure-JAX reference (correctness check), same eval-mode BN semantics.
def reference_forward(x_nchw, params):
    x_nhwc = jnp.transpose(x_nchw, (0, 2, 3, 1))

    def conv(x, w_hwio):
        return lax.conv_general_dilated(
            x, w_hwio, window_strides=(1, 1), padding="SAME",
            dimension_numbers=("NHWC", "HWIO", "NHWC"))

    def bn(x, g, b, m, v, eps=1e-5):
        return (x - m) / jnp.sqrt(v + eps) * g + b

    y = bn(conv(x_nhwc, params["w2"]), params["bn2_gamma"], params["bn2_beta"],
           params["bn2_mean"], params["bn2_var"])
    out = jnp.maximum(y, 0.0)
    out = bn(conv(out, params["w1"]), params["bn1_gamma"], params["bn1_beta"],
             params["bn1_mean"], params["bn1_var"])
    out = out + y               # identity shortcut (stride == 1)
    out = jnp.maximum(out, 0.0)
    return jnp.transpose(out, (0, 3, 1, 2))


# ---------------------------------- main ------------------------------------ #

if __name__ == "__main__":
    N, C, H, W = 2, 4, 16, 16   # in_planes = 4, stride = 1

    key = jax.random.PRNGKey(0)
    keys = jax.random.split(key, 12)

    params = {
        # conv weights in HWIO layout (3, 3, Cin, Cout), no bias (bias=False)
        "w2": 0.1 * jax.random.normal(keys[0], (3, 3, C, C), jnp.float32),
        "w1": 0.1 * jax.random.normal(keys[1], (3, 3, C, C), jnp.float32),
        # bn2 params (eval-mode running stats)
        "bn2_gamma": 0.5 + jax.random.uniform(keys[2], (C,), jnp.float32),
        "bn2_beta": 0.1 * jax.random.normal(keys[3], (C,), jnp.float32),
        "bn2_mean": 0.1 * jax.random.normal(keys[4], (C,), jnp.float32),
        "bn2_var": 0.5 + jax.random.uniform(keys[5], (C,), jnp.float32),
        # bn1 params
        "bn1_gamma": 0.5 + jax.random.uniform(keys[6], (C,), jnp.float32),
        "bn1_beta": 0.1 * jax.random.normal(keys[7], (C,), jnp.float32),
        "bn1_mean": 0.1 * jax.random.normal(keys[8], (C,), jnp.float32),
        "bn1_var": 0.5 + jax.random.uniform(keys[9], (C,), jnp.float32),
    }

    x = jax.random.normal(keys[10], (N, C, H, W), jnp.float32)

    out = jax.block_until_ready(basic_block_dec_forward(x, params))
    ref = jax.block_until_ready(reference_forward(x, params))

    assert out.shape == (N, C, H, W), out.shape
    assert jnp.allclose(out, ref, rtol=1e-4, atol=1e-4), (
        float(jnp.max(jnp.abs(out - ref))))

    print("KERNEL_OK")
</pallas_src>

<mosaic_0001>
module attributes {stable_mosaic.version = 11 : i64} {
  func.func @kernel(%arg0: i32, %arg1: memref<2x16x64xf32, #tpu.memory_space<vmem>>, %arg2: memref<192x64xf32, #tpu.memory_space<vmem>>, %arg3: memref<1x64xf32, #tpu.memory_space<vmem>>, %arg4: memref<192x64xf32, #tpu.memory_space<vmem>>, %arg5: memref<1x64xf32, #tpu.memory_space<vmem>>, %arg6: memref<2x16x64xf32, #tpu.memory_space<vmem>>, %arg7: memref<2x18x64xf32, #tpu.memory_space<vmem>>, %arg8: memref<32x192xf32, #tpu.memory_space<vmem>>) attributes {dimension_semantics = [#tpu.dimension_semantics<arbitrary>], iteration_bounds = array<i64: 1>, scalar_prefetch = 0 : i64, scratch_operands = 2 : i64, tpu.core_type = #tpu.core_type<tc>, window_params = [{pipeline_mode = #tpu.pipeline_mode<synchronous>, transform_indices = @transform_0, window_bounds = array<i64: 2, 16, 64>}, {pipeline_mode = #tpu.pipeline_mode<synchronous>, transform_indices = @transform_1, window_bounds = array<i64: 192, 64>}, {pipeline_mode = #tpu.pipeline_mode<synchronous>, transform_indices = @transform_2, window_bounds = array<i64: 1, 64>}, {pipeline_mode = #tpu.pipeline_mode<synchronous>, transform_indices = @transform_3, window_bounds = array<i64: 192, 64>}, {pipeline_mode = #tpu.pipeline_mode<synchronous>, transform_indices = @transform_4, window_bounds = array<i64: 1, 64>}, {pipeline_mode = #tpu.pipeline_mode<synchronous>, transform_indices = @transform_5, window_bounds = array<i64: 2, 16, 64>}]} {
    %cst = arith.constant 0.000000e+00 : f32
    %0 = vector.broadcast %cst : f32 to vector<2x1x64xf32>
    %c0 = arith.constant 0 : index
    %c0_0 = arith.constant 0 : index
    %c0_1 = arith.constant 0 : index
    %1 = vector.load %arg7[%c0, %c0_0, %c0_1] : memref<2x18x64xf32, #tpu.memory_space<vmem>>, vector<2x1x64xf32>
    tpu.vector_store %arg7[%c0, %c0_0, %c0_1], %0 {strides = array<i32>} : memref<2x18x64xf32, #tpu.memory_space<vmem>>, vector<2x1x64xf32>,
    %c0_2 = arith.constant 0 : index
    %c17 = arith.constant 17 : index
    %c0_3 = arith.constant 0 : index
    %2 = vector.load %arg7[%c0_2, %c17, %c0_3] : memref<2x18x64xf32, #tpu.memory_space<vmem>>, vector<2x1x64xf32>
    tpu.vector_store %arg7[%c0_2, %c17, %c0_3], %0 {strides = array<i32>} : memref<2x18x64xf32, #tpu.memory_space<vmem>>, vector<2x1x64xf32>,
    %c0_4 = arith.constant 0 : index
    %c0_5 = arith.constant 0 : index
    %c0_6 = arith.constant 0 : index
    %3 = vector.load %arg1[%c0_4, %c0_5, %c0_6] : memref<2x16x64xf32, #tpu.memory_space<vmem>>, vector<2x16x64xf32>
    %c0_7 = arith.constant 0 : index
    %c1 = arith.constant 1 : index
    %c0_8 = arith.constant 0 : index
    %4 = vector.load %arg7[%c0_7, %c1, %c0_8] : memref<2x18x64xf32, #tpu.memory_space<vmem>>, vector<2x16x64xf32>
    tpu.vector_store %arg7[%c0_7, %c1, %c0_8], %3 {strides = array<i32>} : memref<2x18x64xf32, #tpu.memory_space<vmem>>, vector<2x16x64xf32>,
    %c0_9 = arith.constant 0 : index
    %c0_10 = arith.constant 0 : index
    %c0_11 = arith.constant 0 : index
    %5 = vector.load %arg7[%c0_9, %c0_10, %c0_11] : memref<2x18x64xf32, #tpu.memory_space<vmem>>, vector<2x16x64xf32>
    %6 = vector.shape_cast %5 : vector<2x16x64xf32> to vector<32x64xf32>
    %c0_12 = arith.constant 0 : index
    %c0_13 = arith.constant 0 : index
    %7 = vector.load %arg8[%c0_12, %c0_13] : memref<32x192xf32, #tpu.memory_space<vmem>>, vector<32x64xf32>
    tpu.vector_store %arg8[%c0_12, %c0_13], %6 {strides = array<i32>} : memref<32x192xf32, #tpu.memory_space<vmem>>, vector<32x64xf32>,
    %c0_14 = arith.constant 0 : index
    %c1_15 = arith.constant 1 : index
    %c0_16 = arith.constant 0 : index
    %8 = vector.load %arg7[%c0_14, %c1_15, %c0_16] : memref<2x18x64xf32, #tpu.memory_space<vmem>>, vector<2x16x64xf32>
    %9 = vector.shape_cast %8 : vector<2x16x64xf32> to vector<32x64xf32>
    %c0_17 = arith.constant 0 : index
    %c64 = arith.constant 64 : index
    %10 = vector.load %arg8[%c0_17, %c64] : memref<32x192xf32, #tpu.memory_space<vmem>>, vector<32x64xf32>
    tpu.vector_store %arg8[%c0_17, %c64], %9 {strides = array<i32>} : memref<32x192xf32, #tpu.memory_space<vmem>>, vector<32x64xf32>,
    %c0_18 = arith.constant 0 : index
    %c2 = arith.constant 2 : index
    %c0_19 = arith.constant 0 : index
    %11 = vector.load %arg7[%c0_18, %c2, %c0_19] : memref<2x18x64xf32, #tpu.memory_space<vmem>>, vector<2x16x64xf32>
    %12 = vector.shape_cast %11 : vector<2x16x64xf32> to vector<32x64xf32>
    %c0_20 = arith.constant 0 : index
    %c128 = arith.constant 128 : index
    %13 = vector.load %arg8[%c0_20, %c128] : memref<32x192xf32, #tpu.memory_space<vmem>>, vector<32x64xf32>
    tpu.vector_store %arg8[%c0_20, %c128], %12 {strides = array<i32>} : memref<32x192xf32, #tpu.memory_space<vmem>>, vector<32x64xf32>,
    %c0_21 = arith.constant 0 : index
    %c0_22 = arith.constant 0 : index
    %14 = vector.load %arg8[%c0_21, %c0_22] : memref<32x192xf32, #tpu.memory_space<vmem>>, vector<32x192xf32>
    %c0_23 = arith.constant 0 : index
    %c0_24 = arith.constant 0 : index
    %15 = vector.load %arg2[%c0_23, %c0_24] : memref<192x64xf32, #tpu.memory_space<vmem>>, vector<192x64xf32>
    %cst_25 = arith.constant dense<0.000000e+00> : vector<32x64xf32>
    %16 = tpu.matmul %14, %15, %cst_25 {dimension_numbers = #tpu.dot_dimension_numbers<[1], [0], [0], [1], [0, 0, 1, 1], [], []>} : vector<32x192xf32>, vector<192x64xf32>, vector<32x64xf32> -> vector<32x64xf32>
    %c0_26 = arith.constant 0 : index
    %c0_27 = arith.constant 0 : index
    %17 = vector.load %arg3[%c0_26, %c0_27] : memref<1x64xf32, #tpu.memory_space<vmem>>, vector<1x64xf32>
    %18 = vector.broadcast %17 : vector<1x64xf32> to vector<32x64xf32>
    %19 = arith.addf %16, %18 : vector<32x64xf32>
    %cst_28 = arith.constant 0.000000e+00 : f32
    %20 = vector.broadcast %cst_28 : f32 to vector<32x64xf32>
    %21 = arith.maximumf %19, %20 : vector<32x64xf32>
    %22 = vector.shape_cast %21 : vector<32x64xf32> to vector<2x16x64xf32>
    %c0_29 = arith.constant 0 : index
    %c1_30 = arith.constant 1 : index
    %c0_31 = arith.constant 0 : index
    %23 = vector.load %arg7[%c0_29, %c1_30, %c0_31] : memref<2x18x64xf32, #tpu.memory_space<vmem>>, vector<2x16x64xf32>
    tpu.vector_store %arg7[%c0_29, %c1_30, %c0_31], %22 {strides = array<i32>} : memref<2x18x64xf32, #tpu.memory_space<vmem>>, vector<2x16x64xf32>,
    %c0_32 = arith.constant 0 : index
    %c0_33 = arith.constant 0 : index
    %c0_34 = arith.constant 0 : index
    %24 = vector.load %arg7[%c0_32, %c0_33, %c0_34] : memref<2x18x64xf32, #tpu.memory_space<vmem>>, vector<2x16x64xf32>
    %25 = vector.shape_cast %24 : vector<2x16x64xf32> to vector<32x64xf32>
    %c0_35 = arith.constant 0 : index
    %c0_36 = arith.constant 0 : index
    %26 = vector.load %arg8[%c0_35, %c0_36] : memref<32x192xf32, #tpu.memory_space<vmem>>, vector<32x64xf32>
    tpu.vector_store %arg8[%c0_35, %c0_36], %25 {strides = array<i32>} : memref<32x192xf32, #tpu.memory_space<vmem>>, vector<32x64xf32>,
    %c0_37 = arith.constant 0 : index
    %c1_38 = arith.constant 1 : index
    %c0_39 = arith.constant 0 : index
    %27 = vector.load %arg7[%c0_37, %c1_38, %c0_39] : memref<2x18x64xf32, #tpu.memory_space<vmem>>, vector<2x16x64xf32>
    %28 = vector.shape_cast %27 : vector<2x16x64xf32> to vector<32x64xf32>
    %c0_40 = arith.constant 0 : index
    %c64_41 = arith.constant 64 : index
    %29 = vector.load %arg8[%c0_40, %c64_41] : memref<32x192xf32, #tpu.memory_space<vmem>>, vector<32x64xf32>
    tpu.vector_store %arg8[%c0_40, %c64_41], %28 {strides = array<i32>} : memref<32x192xf32, #tpu.memory_space<vmem>>, vector<32x64xf32>,
    %c0_42 = arith.constant 0 : index
    %c2_43 = arith.constant 2 : index
    %c0_44 = arith.constant 0 : index
    %30 = vector.load %arg7[%c0_42, %c2_43, %c0_44] : memref<2x18x64xf32, #tpu.memory_space<vmem>>, vector<2x16x64xf32>
    %31 = vector.shape_cast %30 : vector<2x16x64xf32> to vector<32x64xf32>
    %c0_45 = arith.constant 0 : index
    %c128_46 = arith.constant 128 : index
    %32 = vector.load %arg8[%c0_45, %c128_46] : memref<32x192xf32, #tpu.memory_space<vmem>>, vector<32x64xf32>
    tpu.vector_store %arg8[%c0_45, %c128_46], %31 {strides = array<i32>} : memref<32x192xf32, #tpu.memory_space<vmem>>, vector<32x64xf32>,
    %c0_47 = arith.constant 0 : index
    %c0_48 = arith.constant 0 : index
    %33 = vector.load %arg8[%c0_47, %c0_48] : memref<32x192xf32, #tpu.memory_space<vmem>>, vector<32x192xf32>
    %c0_49 = arith.constant 0 : index
    %c0_50 = arith.constant 0 : index
    %34 = vector.load %arg4[%c0_49, %c0_50] : memref<192x64xf32, #tpu.memory_space<vmem>>, vector<192x64xf32>
    %cst_51 = arith.constant dense<0.000000e+00> : vector<32x64xf32>
    %35 = tpu.matmul %33, %34, %cst_51 {dimension_numbers = #tpu.dot_dimension_numbers<[1], [0], [0], [1], [0, 0, 1, 1], [], []>} : vector<32x192xf32>, vector<192x64xf32>, vector<32x64xf32> -> vector<32x64xf32>
    %c0_52 = arith.constant 0 : index
    %c0_53 = arith.constant 0 : index
    %36 = vector.load %arg5[%c0_52, %c0_53] : memref<1x64xf32, #tpu.memory_space<vmem>>, vector<1x64xf32>
    %37 = vector.broadcast %36 : vector<1x64xf32> to vector<32x64xf32>
    %38 = arith.addf %35, %37 : vector<32x64xf32>
    %39 = arith.addf %38, %19 : vector<32x64xf32>
    %cst_54 = arith.constant 0.000000e+00 : f32
    %40 = vector.broadcast %cst_54 : f32 to vector<32x64xf32>
    %41 = arith.maximumf %39, %40 : vector<32x64xf32>
    %42 = vector.shape_cast %41 : vector<32x64xf32> to vector<2x16x64xf32>
    %c0_55 = arith.constant 0 : index
    %c0_56 = arith.constant 0 : index
    %c0_57 = arith.constant 0 : index
    %43 = vector.load %arg6[%c0_55, %c0_56, %c0_57] : memref<2x16x64xf32, #tpu.memory_space<vmem>>, vector<2x16x64xf32>
    tpu.vector_store %arg6[%c0_55, %c0_56, %c0_57], %42 {strides = array<i32>} : memref<2x16x64xf32, #tpu.memory_space<vmem>>, vector<2x16x64xf32>,
    return
  }
  func.func @transform_0(%arg0: i32) -> (i32, i32, i32) {
    %c0_i32 = arith.constant 0 : i32
    %c0_i32_0 = arith.constant 0 : i32
    %c0_i32_1 = arith.constant 0 : i32
    %c0_i32_2 = arith.constant 0 : i32
    return %c0_i32, %c0_i32_0, %c0_i32_1 : i32, i32, i32
  }
  func.func @transform_1(%arg0: i32) -> (i32, i32) {
    %c0_i32 = arith.constant 0 : i32
    %c0_i32_0 = arith.constant 0 : i32
    %c0_i32_1 = arith.constant 0 : i32
    return %c0_i32, %c0_i32_0 : i32, i32
  }
  func.func @transform_2(%arg0: i32) -> (i32, i32) {
    %c0_i32 = arith.constant 0 : i32
    %c0_i32_0 = arith.constant 0 : i32
    %c0_i32_1 = arith.constant 0 : i32
    return %c0_i32, %c0_i32_0 : i32, i32
  }
  func.func @transform_3(%arg0: i32) -> (i32, i32) {
    %c0_i32 = arith.constant 0 : i32
    %c0_i32_0 = arith.constant 0 : i32
    %c0_i32_1 = arith.constant 0 : i32
    return %c0_i32, %c0_i32_0 : i32, i32
  }
  func.func @transform_4(%arg0: i32) -> (i32, i32) {
    %c0_i32 = arith.constant 0 : i32
    %c0_i32_0 = arith.constant 0 : i32
    %c0_i32_1 = arith.constant 0 : i32
    return %c0_i32, %c0_i32_0 : i32, i32
  }
  func.func @transform_5(%arg0: i32) -> (i32, i32, i32) {
    %c0_i32 = arith.constant 0 : i32
    %c0_i32_0 = arith.constant 0 : i32
    %c0_i32_1 = arith.constant 0 : i32
    %c0_i32_2 = arith.constant 0 : i32
    return %c0_i32, %c0_i32_0, %c0_i32_1 : i32, i32, i32
  }
}

</mosaic_0001>

<bundles_post_ra>
// kernel: tile.13
= control target key start
LH: loop header
LB: loop body
LE: loop exit
PB: predicated region body
PF: predicated region fallthrough
CT: control target
= control target key end

     0   :  { %s28_s0 = inlined_call_operand.vmem [shape: f32[4], index: 0, kind: input, shape index: {}]   ;;  %s29_s1 = inlined_call_operand.vmem [shape: f32[16,4], index: 1, kind: output, shape index: {}]  }
   0x1   :  { %v4_v0 = vld [vmem:[%s28_s0] ss:$0 sm:$0xff] }
   0x2   :  { %5 = vst [vmem:[%s29_s1] sm:$0xff] %v4_v0 }
   0x3   :  { %8 = vst [vmem:[%s29_s1 + $0x8] sm:$0xff] %v4_v0 }

// kernel: tile.14
= control target key start
LH: loop header
LB: loop body
LE: loop exit
PB: predicated region body
PF: predicated region fallthrough
CT: control target
= control target key end

     0   :  { %s131_s10 = smov 60   ;;  %s132_s11 = smov 52   ;;  %vm3_vm0 = vcmask 31744   ;;  %vm9_vm1 = vcmask 523744   ;;  %vm15_vm2 = vcmask 490944   ;;  %vm21_vm3 = vcmask 458144   ;;  %s207_s0 = inlined_call_operand.vmem [shape: f32[16,4], index: 0, kind: input, shape index: {}]   ;;  %s208_s1 = inlined_call_operand.vmem [shape: f32[1,64], index: 1, kind: output, shape index: {}]  }
   0x1   :  { %v101_v0 = vld [vmem:[%s207_s0 + $0xf] sm:$0x1]   ;;  %v103_v1 = vld [vmem:[%s207_s0 + $0xd] sm:$0x1]   ;;  %v105_v2 = vld [vmem:[%s207_s0 + $0xb] sm:$0x1]  }
   0x2   :  { %7 = vrot.lane.b32.xlu0 %v101_v0, %s131_s10  ;;  %19 = vrot.lane.b32.xlu1 %v103_v1, %s132_s11  ;;  %s133_s14 = smov 44   ;;  %v102_v3 = vld [vmem:[%s207_s0 + $0xe] sm:$0x1]   ;;  %v104_v4 = vld [vmem:[%s207_s0 + $0xc] sm:$0x1]   ;;  %s134_s19 = smov 56  }
   0x3   :  { %31 = vrot.lane.b32.xlu2 %v105_v2, %s133_s14  ;;  %s135_s20 = smov 48   ;;  %v106_v5 = vld [vmem:[%s207_s0 + $0xa] sm:$0x1]   ;;  %s136_s23 = smov 40   ;;  %v107_v6 = vld [vmem:[%s207_s0 + $0x9] sm:$0x1]  }
   0x4   :  { %v108_v7 = vld [vmem:[%s207_s0 + $0x8] sm:$0x1]   ;;  %s137_s28 = smov 36   ;;  %s138_s29 = smov 32   ;;  %v109_v8 = vld [vmem:[%s207_s0 + $0x7] sm:$0x1]  }
   0x5   :  { %s139_s3 = smov 28   ;;  %v110_v9 = vld [vmem:[%s207_s0 + $0x6] sm:$0x1]   ;;  %v111_v10 = vld [vmem:[%s207_s0 + $0x5] sm:$0x1]   ;;  %s140_s8 = smov 24  }
   0x6   :  { %s141_s9 = smov 20   ;;  %v112_v11 = vld [vmem:[%s207_s0 + $0x4] sm:$0x1]   ;;  %s142_s12 = smov 16   ;;  %v113_v12 = vld [vmem:[%s207_s0 + $0x3] sm:$0x1]  }
   0x7   :  { %v114_v13 = vld [vmem:[%s207_s0 + $0x2] sm:$0x1]   ;;  %s143_s17 = smov 12   ;;  %s144_s18 = smov 8   ;;  %v115_v14 = vld [vmem:[%s207_s0 + $0x1] sm:$0x1]  }
   0x8   :  { %s145_s21 = smov 4   ;;  %v2_v15 = vld [vmem:[%s207_s0] sm:$0x1]   ;;  %vm27_vm4 = vcmask 425344   ;;  %vm33_vm5 = vcmask 392544   ;;  %vm39_vm6 = vcmask 359744  }
   0x9   :  { %4 = vst.msk [vmem:[#allocation0] sm:$0x1] %vm3_vm0, %v2_v15   ;;  %vm45_vm7 = vcmask 326944   ;;  %vm51_vm8 = vcmask 294144   ;;  %vm57_vm9 = vcmask 261344   ;;  %vm63_vm10 = vcmask 228544  }
   0xa   :  { %13 = vrot.lane.b32.xlu0 %v102_v3, %s134_s19  ;;  %25 = vrot.lane.b32.xlu1 %v104_v4, %s135_s20  ;;  %vm69_vm11 = vcmask 195744   ;;  %vm75_vm12 = vcmask 162944   ;;  %vm81_vm13 = vcmask 130144   ;;  %vm87_vm14 = vcmask 97344  }
   0xb   :  { %37 = vrot.lane.b32.xlu2 %v106_v5, %s136_s23  ;;  %vm93_vm15 = vcmask 64544  }
  0x12   :  { %43 = vrot.lane.b32.xlu0 %v107_v6, %s137_s28  ;;  %49 = vrot.lane.b32.xlu1 %v108_v7, %s138_s29 }
  0x13   :  { %55 = vrot.lane.b32.xlu2 %v109_v8, %s139_s3 }
  0x1a   :  { %61 = vrot.lane.b32.xlu0 %v110_v9, %s140_s8  ;;  %67 = vrot.lane.b32.xlu1 %v111_v10, %s141_s9 }
  0x1b   :  { %73 = vrot.lane.b32.xlu2 %v112_v11, %s142_s12 }
  0x22   :  { %79 = vrot.lane.b32.xlu0 %v113_v12, %s143_s17  ;;  %85 = vrot.lane.b32.xlu1 %v114_v13, %s144_s18 }
  0x23   :  { %91 = vrot.lane.b32.xlu2 %v115_v14, %s145_s21 }
  0x5d   :  { %v32_v16 = vpop.permute.xlu2 %31  }
  0x65   :  { %v38_v17 = vpop.permute.xlu2 %37  }
  0x6d   :  { %v56_v18 = vpop.permute.xlu2 %55  }
  0x74   :  { %v8_v19 = vpop.permute.xlu0 %7   ;;  %v20_v20 = vpop.permute.xlu1 %19  }
  0x75   :  { %10 = vst.msk [vmem:[#allocation0] sm:$0x1] %vm9_vm1, %v8_v19   ;;  %v74_v21 = vpop.permute.xlu2 %73  }
  0x7c   :  { %v14_v22 = vpop.permute.xlu0 %13   ;;  %v26_v23 = vpop.permute.xlu1 %25  }
  0x7d   :  { %16 = vst.msk [vmem:[#allocation0] sm:$0x1] %vm15_vm2, %v14_v22   ;;  %v92_v24 = vpop.permute.xlu2 %91  }
  0x7e   :  { %22 = vst.msk [vmem:[#allocation0] sm:$0x1] %vm21_vm3, %v20_v20  }
  0x7f   :  { %28 = vst.msk [vmem:[#allocation0] sm:$0x1] %vm27_vm4, %v26_v23  }
  0x80   :  { %34 = vst.msk [vmem:[#allocation0] sm:$0x1] %vm33_vm5, %v32_v16  }
  0x81   :  { %40 = vst.msk [vmem:[#allocation0] sm:$0x1] %vm39_vm6, %v38_v17  }
  0x84   :  { %v44_v25 = vpop.permute.xlu0 %43   ;;  %v50_v26 = vpop.permute.xlu1 %49  }
  0x85   :  { %46 = vst.msk [vmem:[#allocation0] sm:$0x1] %vm45_vm7, %v44_v25  }
  0x86   :  { %52 = vst.msk [vmem:[#allocation0] sm:$0x1] %vm51_vm8, %v50_v26  }
  0x87   :  { %58 = vst.msk [vmem:[#allocation0] sm:$0x1] %vm57_vm9, %v56_v18  }
  0x8c   :  { %v62_v27 = vpop.permute.xlu0 %61   ;;  %v68_v28 = vpop.permute.xlu1 %67  }
  0x8d   :  { %64 = vst.msk [vmem:[#allocation0] sm:$0x1] %vm63_vm10, %v62_v27  }
  0x8e   :  { %70 = vst.msk [vmem:[#allocation0] sm:$0x1] %vm69_vm11, %v68_v28  }
  0x8f   :  { %76 = vst.msk [vmem:[#allocation0] sm:$0x1] %vm75_vm12, %v74_v21  }
  0x94   :  { %v80_v29 = vpop.permute.xlu0 %79   ;;  %v86_v30 = vpop.permute.xlu1 %85  }
  0x95   :  { %82 = vst.msk [vmem:[#allocation0] sm:$0x1] %vm81_vm13, %v80_v29  }
  0x96   :  { %88 = vst.msk [vmem:[#allocation0] sm:$0x1] %vm87_vm14, %v86_v30  }
  0x97   :  { %94 = vst.msk [vmem:[#allocation0] sm:$0x1] %vm93_vm15, %v92_v24  }
  0x9e   :  { %v97_v31 = vld [vmem:[#allocation0] sm:$0x1] }
  0x9f   :  { %100 = vst [vmem:[%s208_s1] sm:$0x1] %v97_v31 }

// kernel: basic_block_dec_forward.1
= control target key start
LH: loop header
LB: loop body
LE: loop exit
PB: predicated region body
PF: predicated region fallthrough
CT: control target
= control target key end

     0   :  { %vm29_vm0 = vcmask 523264   ;;  %vm20_vm1 = vcmask 516096   ;;  %v363_v3 = vmov 0.0   ;;  %s364_s16 = smov 64   ;;  %vm62_vm2 = vcmask 1048064   ;;  %s641_s0 = inlined_call_operand.vmem [shape: f32[2,16,64], index: 0, kind: input, shape index: {}]   ;;  %s642_s1 = inlined_call_operand.vmem [shape: f32[192,64], index: 1, kind: input, shape index: {}]   ;;  %s643_s2 = inlined_call_operand.vmem [shape: f32[1,64], index: 2, kind: input, shape index: {}]   ;;  %s644_s3 = inlined_call_operand.vmem [shape: f32[192,64], index: 3, kind: input, shape index: {}]   ;;  %s645_s4 = inlined_call_operand.vmem [shape: f32[1,64], index: 4, kind: input, shape index: {}]   ;;  %s646_s5 = inlined_call_operand.vmem [shape: f32[2,16,64], index: 5, kind: output, shape index: {}]  }
   0x1   :  { %v25_v0 = vld [vmem:[%s641_s0] sm:$0xff]  ;;  %v26_v1 = vld [vmem:[%s641_s0 + $0x8] sm:$0xff]  ;;  %v27_v2 = vld [vmem:[%s641_s0 + $0x10] sm:$0xff]  ;;  %21 = vst.msk [vmem:[#allocation2] sm:$0x1] %vm20_vm1, %v363_v3 }
   0x2   :  { %30 = vst.msk [vmem:[#allocation2 + $0x1] sm:$0xff] %vm29_vm0, %v25_v0  ;;  %v28_v4 = vld [vmem:[%s641_s0 + $0x18] sm:$0xff]  ;;  %v97_v6 = vld [vmem:[%s642_s1 + $0x70] sm:$0xff]  ;;  %v96_v7 = vld [vmem:[%s642_s1 + $0x68] sm:$0xff] }
   0x3   :  { %v98_v5 = vld [vmem:[%s642_s1 + $0x78] sm:$0xff]  ;;  %31 = vst.msk [vmem:[#allocation2 + $0x9] sm:$0xff] %vm29_vm0, %v26_v1  ;;  %v95_v9 = vld [vmem:[%s642_s1 + $0x60] sm:$0xff]  ;;  %v105_v10 = vld [vmem:[%s642_s1 + $0xb0] sm:$0xff] }
   0x4   :  { %123 = vmatpush.msra.mxu0 %v98_v5  ;;  %32 = vst.msk [vmem:[#allocation2 + $0x19] sm:$0xff] %vm29_vm0, %v27_v2  ;;  %v106_v8 = vld [vmem:[%s642_s1 + $0xb8] sm:$0xff]  ;;  %v104_v11 = vld [vmem:[%s642_s1 + $0xa8] sm:$0xff]  ;;  %v93_v14 = vld [vmem:[%s642_s1 + $0x50] sm:$0xff] }
   0x5   :  { %33 = vst.msk [vmem:[#allocation2 + $0x21] sm:$0xff] %vm29_vm0, %v28_v4  ;;  %160 = vmatpush.msra.mxu1 %v106_v8  ;;  %v94_v12 = vld [vmem:[%s642_s1 + $0x58] sm:$0xff]  ;;  %v92_v16 = vld [vmem:[%s642_s1 + $0x48] sm:$0xff]  ;;  %v91_v17 = vld [vmem:[%s642_s1 + $0x40] sm:$0xff] }
   0x6   :  { %124 = vmatpush.msra.mxu0 %v97_v6  ;;  %23 = vst.msk [vmem:[#allocation2 + $0x11] sm:$0x1] %vm20_vm1, %v363_v3  ;;  %v90_v19 = vld [vmem:[%s642_s1 + $0x38] sm:$0xff]  ;;  %v89_v21 = vld [vmem:[%s642_s1 + $0x30] sm:$0xff]  ;;  %v88_v22 = vld [vmem:[%s642_s1 + $0x28] sm:$0xff] }
   0x7   :  { %24 = vst.msk [vmem:[#allocation2 + $0x29] sm:$0x1] %vm20_vm1, %v363_v3  ;;  %161 = vmatpush.msra.mxu1 %v105_v10  ;;  %v87_v23 = vld [vmem:[%s642_s1 + $0x20] sm:$0xff]  ;;  %v86_v25 = vld [vmem:[%s642_s1 + $0x18] sm:$0xff]  ;;  %v85_v27 = vld [vmem:[%s642_s1 + $0x10] sm:$0xff] }
   0x8   :  { %125 = vmatpush.msra.mxu0 %v96_v7  ;;  %22 = vst.msk [vmem:[#allocation2 + $0x18] sm:$0x1] %vm20_vm1, %v363_v3  ;;  %v103_v26 = vld [vmem:[%s642_s1 + $0xa0] sm:$0xff]  ;;  %v102_v28 = vld [vmem:[%s642_s1 + $0x98] sm:$0xff]  ;;  %v84_v29 = vld [vmem:[%s642_s1 + $0x8] sm:$0xff] }
   0x9   :  { %v42_v13 = vld [vmem:[#allocation2 + $0x1] sm:$0xff]  ;;  %162 = vmatpush.msra.mxu1 %v104_v11  ;;  %v101_v30 = vld [vmem:[%s642_s1 + $0x90] sm:$0xff]  ;;  %v260_v53 = vld [vmem:[%s644_s3 + $0xb8] sm:$0xff] }
   0xa   :  { %126 = vmatpush.msra.mxu0 %v95_v9  ;;  %50 = vrot.lane.b32.xlu0 %v42_v13, %s364_s16  ;;  %v43_v18 = vld [vmem:[#allocation2 + $0x9] sm:$0xff]  ;;  %v34_v24 = vld [vmem:[#allocation2] sm:$0xff]  ;;  %v256_v57 = vld [vmem:[%s644_s3 + $0x98] sm:$0xff] }
   0xb   :  { %v44_v15 = vld [vmem:[#allocation2 + $0x19] sm:$0xff]  ;;  %38 = vst.msk [vmem:[#allocation3] sm:$0xff] %vm29_vm0, %v34_v24  ;;  %163 = vmatpush.msra.mxu1 %v103_v26  ;;  %v67_v31 = vld [vmem:[#allocation2 + $0x2] sm:$0xff]  ;;  %314 = vmatpush.msra.mxu3 %v260_v53  ;;  %v259_v54 = vld [vmem:[%s644_s3 + $0xb0] sm:$0xff] }
   0xc   :  { %127 = vmatpush.msra.mxu0 %v94_v12  ;;  %54 = vrot.lane.b32.xlu1 %v44_v15, %s364_s16  ;;  %v45_v20 = vld [vmem:[#allocation2 + $0x21] sm:$0xff]  ;;  %71 = vst.msk [vmem:[#allocation3 + $0x8] sm:$0xff] %vm29_vm0, %v67_v31  ;;  %v255_v58 = vld [vmem:[%s644_s3 + $0x90] sm:$0xff]  ;;  %v361_v61 = vld [vmem:[%s643_s2] ss:$0 sm:$0xff] }
   0xd   :  { %164 = vmatpush.msra.mxu1 %v102_v28  ;;  %v83_v32 = vld [vmem:[%s642_s1] sm:$0xff]  ;;  %v100_v33 = vld [vmem:[%s642_s1 + $0x88] sm:$0xff]  ;;  %315 = vmatpush.msra.mxu3 %v259_v54 }
   0xe   :  { %128 = vmatpush.msra.mxu0 %v93_v14  ;;  %v35_v34 = vld [vmem:[#allocation2 + $0x8] sm:$0xff]  ;;  %v99_v35 = vld [vmem:[%s642_s1 + $0x80] sm:$0xff] }
   0xf   :  { %165 = vmatpush.msra.mxu1 %v101_v30  ;;  %39 = vst.msk [vmem:[#allocation3 + $0x10] sm:$0xff] %vm29_vm0, %v35_v34  ;;  %v36_v36 = vld [vmem:[#allocation2 + $0x18] sm:$0xff]  ;;  %v68_v37 = vld [vmem:[#allocation2 + $0xa] sm:$0xff]  ;;  %v37_v39 = vld [vmem:[#allocation2 + $0x20] sm:$0xff] }
  0x10   :  { %129 = vmatpush.msra.mxu0 %v92_v16  ;;  %40 = vst.msk [vmem:[#allocation3 + $0x20] sm:$0xff] %vm29_vm0, %v36_v36  ;;  %v69_v41 = vld [vmem:[#allocation2 + $0x1a] sm:$0xff]  ;;  %v70_v43 = vld [vmem:[#allocation2 + $0x22] sm:$0xff] }
  0x11   :  { %166 = vmatpush.msra.mxu1 %v100_v33  ;;  %72 = vst.msk [vmem:[#allocation3 + $0x18] sm:$0xff] %vm29_vm0, %v68_v37  ;;  %v258_v55 = vld [vmem:[%s644_s3 + $0xa8] sm:$0xff]  ;;  %v257_v56 = vld [vmem:[%s644_s3 + $0xa0] sm:$0xff] }
  0x12   :  { %130 = vmatpush.msra.mxu0 %v91_v17  ;;  %52 = vrot.lane.b32.xlu0 %v43_v18, %s364_s16  ;;  %41 = vst.msk [vmem:[#allocation3 + $0x30] sm:$0xff] %vm29_vm0, %v37_v39  ;;  %v254_v60 = vld [vmem:[%s644_s3 + $0x88] sm:$0xff]  ;;  %v253_v62 = vld [vmem:[%s644_s3 + $0x80] sm:$0xff] }
  0x13   :  { %167 = vmatpush.msra.mxu1 %v99_v35  ;;  %v76_v38 = vld [vmem:[#allocation3 + $0x8] sm:$0xff]  ;;  %73 = vst.msk [vmem:[#allocation3 + $0x28] sm:$0xff] %vm29_vm0, %v69_v41  ;;  %316 = vmatpush.msra.mxu3 %v258_v55  ;;  %v250_v24 = vld [vmem:[%s644_s3 + $0x68] sm:$0xff]  ;;  %v249_v26 = vld [vmem:[%s644_s3 + $0x60] sm:$0xff] }
  0x14   :  { %131 = vmatpush.msra.mxu0 %v90_v19  ;;  %56 = vrot.lane.b32.xlu1 %v45_v20, %s364_s16  ;;  %74 = vst.msk [vmem:[#allocation3 + $0x38] sm:$0xff] %vm29_vm0, %v70_v43  ;;  %v246_v33 = vld [vmem:[%s644_s3 + $0x48] sm:$0xff]  ;;  %v245_v34 = vld [vmem:[%s644_s3 + $0x40] sm:$0xff]  ;;  %v244_v35 = vld [vmem:[%s644_s3 + $0x38] sm:$0xff] }
  0x15   :  { %351 = vmatmul.msk.f32.vlgmr.msra.gmra.mxu1 %vm29_vm0, %v76_v38  ;;  %317 = vmatpush.msra.mxu3 %v257_v56  ;;  %v243_v41 = vld [vmem:[%s644_s3 + $0x30] sm:$0xff]  ;;  %v241_v43 = vld [vmem:[%s644_s3 + $0x20] sm:$0xff] }
  0x16   :  { %132 = vmatpush.msra.mxu0 %v89_v21  ;;  %v252_v21 = vld [vmem:[%s644_s3 + $0x78] sm:$0xff] }
  0x17   :  { %318 = vmatpush.msra.mxu3 %v256_v57  ;;  %277 = vmatpush.msra.mxu2 %v252_v21 }
  0x18   :  { %133 = vmatpush.msra.mxu0 %v88_v22  ;;  %v78_v40 = vld [vmem:[#allocation3 + $0x18] sm:$0xff]  ;;  %v251_v22 = vld [vmem:[%s644_s3 + $0x70] sm:$0xff] }
  0x19   :  { %319 = vmatpush.msra.mxu3 %v255_v58  ;;  %278 = vmatpush.msra.mxu2 %v251_v22  ;;  %v362_v58 = vld [vmem:[%s645_s4] ss:$0 sm:$0xff] }
  0x1a   :  { %134 = vmatpush.msra.mxu0 %v87_v23  ;;  %v80_v42 = vld [vmem:[#allocation3 + $0x28] sm:$0xff] }
  0x1b   :  { %v82_v46 = vld [vmem:[#allocation3 + $0x38] sm:$0xff]  ;;  %320 = vmatpush.msra.mxu3 %v254_v60  ;;  %279 = vmatpush.msra.mxu2 %v250_v24 }
  0x1c   :  { %135 = vmatpush.msra.mxu0 %v86_v25 }
  0x1d   :  { %352 = vmatmul.msk.f32.gmra.mxu1 %vm29_vm0, %v78_v40  ;;  %321 = vmatpush.msra.mxu3 %v253_v62 }
  0x1e   :  { %136 = vmatpush.msra.mxu0 %v85_v27  ;;  %280 = vmatpush.msra.mxu2 %v249_v26 }
  0x20   :  { %137 = vmatpush.msra.mxu0 %v84_v29  ;;  %v248_v29 = vld [vmem:[%s644_s3 + $0x58] sm:$0xff] }
  0x21   :  { %281 = vmatpush.msra.mxu2 %v248_v29 }
  0x22   :  { %138 = vmatpush.msra.mxu0 %v83_v32  ;;  %v247_v32 = vld [vmem:[%s644_s3 + $0x50] sm:$0xff] }
  0x23   :  { %282 = vmatpush.msra.mxu2 %v247_v32 }
  0x25   :  { %353 = vmatmul.msk.f32.gmra.mxu1 %vm29_vm0, %v80_v42  ;;  %283 = vmatpush.msra.mxu2 %v246_v33  ;;  %v242_v42 = vld [vmem:[%s644_s3 + $0x28] sm:$0xff] }
  0x27   :  { %284 = vmatpush.msra.mxu2 %v245_v34 }
  0x29   :  { %285 = vmatpush.msra.mxu2 %v244_v35 }
  0x2b   :  { %286 = vmatpush.msra.mxu2 %v243_v41 }
  0x2d   :  { %354 = vmatmul.msk.f32.gmra.mxu1 %vm29_vm0, %v82_v46  ;;  %287 = vmatpush.msra.mxu2 %v242_v42  ;;  %v240_v46 = vld [vmem:[%s644_s3 + $0x18] sm:$0xff] }
  0x2f   :  { %288 = vmatpush.msra.mxu2 %v241_v43 }
  0x31   :  { %289 = vmatpush.msra.mxu2 %v240_v46 }
  0x7c   :  { %v51_v44 = vpop.permute.xlu0 %50 }
  0x7d   :  { %63 = vst.msk [vmem:[#allocation3] sm:$0xff] %vm62_vm2, %v51_v44 }
  0x7e   :  { %v55_v45 = vpop.permute.xlu1 %54 }
  0x7f   :  { %65 = vst.msk [vmem:[#allocation3 + $0x20] sm:$0xff] %vm62_vm2, %v55_v45 }
  0x84   :  { %v53_v47 = vpop.permute.xlu0 %52  ;;  %v75_v48 = vld [vmem:[#allocation3] sm:$0xff] }
  0x85   :  { %64 = vst.msk [vmem:[#allocation3 + $0x10] sm:$0xff] %vm62_vm2, %v53_v47  ;;  %139 = vmatmul.f32.vlgmr.msra.gmra.mxu0 %v75_v48  ;;  %v239_v47 = vld [vmem:[%s644_s3 + $0x10] sm:$0xff]  ;;  %v238_v48 = vld [vmem:[%s644_s3 + $0x8] sm:$0xff] }
  0x86   :  { %v57_v49 = vpop.permute.xlu1 %56  ;;  %v79_v51 = vld [vmem:[#allocation3 + $0x20] sm:$0xff]  ;;  %290 = vmatpush.msra.mxu2 %v239_v47 }
  0x87   :  { %66 = vst.msk [vmem:[#allocation3 + $0x30] sm:$0xff] %vm62_vm2, %v57_v49  ;;  %v237_v49 = vld [vmem:[%s644_s3] sm:$0xff] }
  0x88   :  { %291 = vmatpush.msra.mxu2 %v238_v48 }
  0x8a   :  { %292 = vmatpush.msra.mxu2 %v237_v49 }
  0x8c   :  { %v77_v50 = vld [vmem:[#allocation3 + $0x10] sm:$0xff] }
  0x8d   :  { %142 = vmatmul.f32.gmra.mxu0 %v77_v50 }
  0x8e   :  { %v81_v52 = vld [vmem:[#allocation3 + $0x30] sm:$0xff] }
  0x92   :  { %v169_v59 = vpop.f32.mrf.mxu1 }
  0x95   :  { %145 = vmatmul.f32.gmra.mxu0 %v79_v51 }
  0x9a   :  { %v172_v2 = vpop.f32.mrf.mxu1 }
  0x9d   :  { %148 = vmatmul.f32.gmra.mxu0 %v81_v52 }
  0xa2   :  { %v175_v9 = vpop.f32.mrf.mxu1 }
  0xaa   :  { %v178_v20 = vpop.f32.mrf.mxu1 }
 0x102   :  { %v140_v63 = vpop.f32.mrf.mxu0 }
 0x103   :  { %v141_v0 = vadd.f32 %v361_v61, %v140_v63 }
 0x105   :  { %v534_v1 = vadd.f32 %v169_v59, %v141_v0 }
 0x107   :  { %v181_v3 = vmax.f32 %v534_v1, 0.0 }
 0x109   :  { %185 = vst.msk [vmem:[#allocation2 + $0x1] sm:$0xff] %vm29_vm0, %v181_v3 }
 0x10a   :  { %v143_v4 = vpop.f32.mrf.mxu0 }
 0x10b   :  { %v144_v5 = vadd.f32 %v361_v61, %v143_v4 }
 0x10d   :  { %v538_v6 = vadd.f32 %v172_v2, %v144_v5 }
 0x10f   :  { %v182_v7 = vmax.f32 %v538_v6, 0.0 }
 0x110   :  { %v197_v8 = vld [vmem:[#allocation2 + $0x1] sm:$0xff] }
 0x111   :  { %v189_v10 = vld [vmem:[#allocation2] sm:$0xff]  ;;  %186 = vst.msk [vmem:[#allocation2 + $0x9] sm:$0xff] %vm29_vm0, %v182_v7  ;;  %205 = vrot.lane.b32.xlu2 %v197_v8, %s364_s16 }
 0x112   :  { %v146_v11 = vpop.f32.mrf.mxu0  ;;  %193 = vst.msk [vmem:[#allocation3] sm:$0xff] %vm29_vm0, %v189_v10 }
 0x113   :  { %v147_v12 = vadd.f32 %v361_v61, %v146_v11 }
 0x115   :  { %v544_v13 = vadd.f32 %v175_v9, %v147_v12 }
 0x117   :  { %v183_v14 = vmax.f32 %v544_v13, 0.0 }
 0x118   :  { %v198_v15 = vld [vmem:[#allocation2 + $0x9] sm:$0xff] }
 0x119   :  { %v221_v16 = vld [vmem:[#allocation2 + $0x2] sm:$0xff]  ;;  %v222_v17 = vld [vmem:[#allocation2 + $0xa] sm:$0xff]  ;;  %187 = vst.msk [vmem:[#allocation2 + $0x19] sm:$0xff] %vm29_vm0, %v183_v14  ;;  %207 = vrot.lane.b32.xlu2 %v198_v15, %s364_s16 }
 0x11a   :  { %v190_v18 = vld [vmem:[#allocation2 + $0x8] sm:$0xff]  ;;  %v149_v19 = vpop.f32.mrf.mxu0  ;;  %225 = vst.msk [vmem:[#allocation3 + $0x8] sm:$0xff] %vm29_vm0, %v221_v16 }
 0x11b   :  { %v150_v23 = vadd.f32 %v361_v61, %v149_v19  ;;  %226 = vst.msk [vmem:[#allocation3 + $0x18] sm:$0xff] %vm29_vm0, %v222_v17 }
 0x11c   :  { %194 = vst.msk [vmem:[#allocation3 + $0x10] sm:$0xff] %vm29_vm0, %v190_v18 }
 0x11d   :  { %v561_v25 = vadd.f32 %v178_v20, %v150_v23 }
 0x11f   :  { %v184_v27 = vmax.f32 %v561_v25, 0.0 }
 0x120   :  { %v199_v28 = vld [vmem:[#allocation2 + $0x19] sm:$0xff] }
 0x121   :  { %v191_v30 = vld [vmem:[#allocation2 + $0x18] sm:$0xff]  ;;  %188 = vst.msk [vmem:[#allocation2 + $0x21] sm:$0xff] %vm29_vm0, %v184_v27  ;;  %209 = vrot.lane.b32.xlu0 %v199_v28, %s364_s16 }
 0x122   :  { %v230_v31 = vld [vmem:[#allocation3 + $0x8] sm:$0xff]  ;;  %195 = vst.msk [vmem:[#allocation3 + $0x20] sm:$0xff] %vm29_vm0, %v191_v30  ;;  %v232_v39 = vld [vmem:[#allocation3 + $0x18] sm:$0xff] }
 0x123   :  { %355 = vmatmul.msk.f32.vlgmr.msra.gmra.mxu3 %vm29_vm0, %v230_v31 }
 0x128   :  { %v200_v36 = vld [vmem:[#allocation2 + $0x21] sm:$0xff] }
 0x129   :  { %v223_v37 = vld [vmem:[#allocation2 + $0x1a] sm:$0xff]  ;;  %v224_v38 = vld [vmem:[#allocation2 + $0x22] sm:$0xff]  ;;  %211 = vrot.lane.b32.xlu1 %v200_v36, %s364_s16 }
 0x12a   :  { %227 = vst.msk [vmem:[#allocation3 + $0x28] sm:$0xff] %vm29_vm0, %v223_v37  ;;  %v192_v40 = vld [vmem:[#allocation2 + $0x20] sm:$0xff] }
 0x12b   :  { %356 = vmatmul.msk.f32.gmra.mxu3 %vm29_vm0, %v232_v39  ;;  %228 = vst.msk [vmem:[#allocation3 + $0x38] sm:$0xff] %vm29_vm0, %v224_v38 }
 0x12c   :  { %196 = vst.msk [vmem:[#allocation3 + $0x30] sm:$0xff] %vm29_vm0, %v192_v40 }
 0x131   :  { %v234_v44 = vld [vmem:[#allocation3 + $0x28] sm:$0xff] }
 0x132   :  { %v236_v45 = vld [vmem:[#allocation3 + $0x38] sm:$0xff] }
 0x133   :  { %357 = vmatmul.msk.f32.gmra.mxu3 %vm29_vm0, %v234_v44 }
 0x13b   :  { %358 = vmatmul.msk.f32.gmra.mxu3 %vm29_vm0, %v236_v45 }
 0x16b   :  { %v206_v50 = vpop.permute.xlu2 %205 }
 0x16c   :  { %217 = vst.msk [vmem:[#allocation3] sm:$0xff] %vm62_vm2, %v206_v50 }
 0x173   :  { %v208_v51 = vpop.permute.xlu2 %207  ;;  %v229_v52 = vld [vmem:[#allocation3] sm:$0xff] }
 0x174   :  { %218 = vst.msk [vmem:[#allocation3 + $0x10] sm:$0xff] %vm62_vm2, %v208_v51  ;;  %293 = vmatmul.f32.vlgmr.msra.gmra.mxu2 %v229_v52 }
 0x17b   :  { %v231_v53 = vld [vmem:[#allocation3 + $0x10] sm:$0xff] }
 0x17c   :  { %296 = vmatmul.f32.gmra.mxu2 %v231_v53 }
 0x193   :  { %v210_v54 = vpop.permute.xlu0 %209 }
 0x194   :  { %219 = vst.msk [vmem:[#allocation3 + $0x20] sm:$0xff] %vm62_vm2, %v210_v54 }
 0x19b   :  { %v212_v55 = vpop.permute.xlu1 %211  ;;  %v233_v56 = vld [vmem:[#allocation3 + $0x20] sm:$0xff] }
 0x19c   :  { %220 = vst.msk [vmem:[#allocation3 + $0x30] sm:$0xff] %vm62_vm2, %v212_v55  ;;  %299 = vmatmul.f32.gmra.mxu2 %v233_v56 }
 0x1a3   :  { %v235_v57 = vld [vmem:[#allocation3 + $0x30] sm:$0xff] }
 0x1a4   :  { %302 = vmatmul.f32.gmra.mxu2 %v235_v57 }
 0x1a6   :  { %v323_v59 = vpop.f32.mrf.mxu3 }
 0x1ae   :  { %v326_v4 = vpop.f32.mrf.mxu3 }
 0x1b6   :  { %v329_v9 = vpop.f32.mrf.mxu3 }
 0x1be   :  { %v332_v16 = vpop.f32.mrf.mxu3 }
 0x1f7   :  { %v294_v60 = vpop.f32.mrf.mxu2 }
 0x1f8   :  { %v295_v61 = vadd.f32 %v362_v58, %v294_v60 }
 0x1fa   :  { %v324_v62 = vadd.f32 %v323_v59, %v295_v61 }
 0x1fc   :  { %v335_v63 = vadd.f32 %v324_v62, %v534_v1 }
 0x1fe   :  { %v339_v0 = vmax.f32 %v335_v63, 0.0 }
 0x1ff   :  { %v297_v2 = vpop.f32.mrf.mxu2 }
 0x200   :  { %343 = vst.msk [vmem:[%s646_s5] sm:$0xff] %vm29_vm0, %v339_v0  ;;  %v298_v3 = vadd.f32 %v362_v58, %v297_v2 }
 0x202   :  { %v327_v5 = vadd.f32 %v326_v4, %v298_v3 }
 0x204   :  { %v336_v7 = vadd.f32 %v327_v5, %v538_v6 }
 0x206   :  { %v340_v8 = vmax.f32 %v336_v7, 0.0 }
 0x208   :  { %344 = vst.msk [vmem:[%s646_s5 + $0x8] sm:$0xff] %vm29_vm0, %v340_v8 }
 0x21f   :  { %v300_v1 = vpop.f32.mrf.mxu2 }
 0x220   :  { %v301_v10 = vadd.f32 %v362_v58, %v300_v1 }
 0x222   :  { %v330_v11 = vadd.f32 %v329_v9, %v301_v10 }
 0x224   :  { %v337_v12 = vadd.f32 %v330_v11, %v544_v13 }
 0x226   :  { %v341_v14 = vmax.f32 %v337_v12, 0.0 }
 0x227   :  { %v303_v15 = vpop.f32.mrf.mxu2 }
 0x228   :  { %345 = vst.msk [vmem:[%s646_s5 + $0x10] sm:$0xff] %vm29_vm0, %v341_v14  ;;  %v304_v6 = vadd.f32 %v362_v58, %v303_v15 }
 0x22a   :  { %v333_v17 = vadd.f32 %v332_v16, %v304_v6 }
 0x22c   :  { %v338_v18 = vadd.f32 %v333_v17, %v561_v25 }
 0x22e   :  { %v342_v19 = vmax.f32 %v338_v18, 0.0 }
 0x230   :  { %346 = vst.msk [vmem:[%s646_s5 + $0x18] sm:$0xff] %vm29_vm0, %v342_v19 }

</bundles_post_ra>
